<compile_context>
chip_gen: v5e
topology: v5e:2x2
jax: 0.10.0
libtpu: 0.0.40
codegen_flags: <defaults>
</compile_context>

<pallas_src>
import jax
import jax.numpy as jnp
from jax.experimental import pallas as pl
from jax.experimental.pallas import tpu as pltpu


def _dsdae_kernel(x_ref,
                  w1_ref, b1_ref, w2_ref, b2_ref, w3_ref, b3_ref,
                  w4_ref, b4_ref, w5_ref, b5_ref, w6_ref, b6_ref,
                  dec_ref, enc_ref):
    """One batch tile: 6 matmuls (bf16 operands, f32 accum) + ReLU / Sigmoid."""
    h = x_ref[...]                       # (in_dim, TB) bf16

    def dense_relu(w_ref, b_ref, h_bf16):
        # (out, in) @ (in, TB) -> (out, TB), f32 accumulation, f32 bias/activation.
        z = jnp.dot(w_ref[...], h_bf16, preferred_element_type=jnp.float32) + b_ref[...]
        return jnp.maximum(z, 0.0)

    # ---- Encoder ----  (dropout = identity in eval mode)
    h1 = dense_relu(w1_ref, b1_ref, h)
    h2 = dense_relu(w2_ref, b2_ref, h1.astype(jnp.bfloat16))
    enc = dense_relu(w3_ref, b3_ref, h2.astype(jnp.bfloat16))
    enc_ref[...] = enc.astype(enc_ref.dtype)

    # ---- Decoder ----
    d1 = dense_relu(w4_ref, b4_ref, enc.astype(jnp.bfloat16))
    d2 = dense_relu(w5_ref, b5_ref, d1.astype(jnp.bfloat16))
    z = jnp.dot(w6_ref[...], d2.astype(jnp.bfloat16),
                preferred_element_type=jnp.float32) + b6_ref[...]
    # Sigmoid: exp on EUP + approx reciprocal on EUP -> VALU stays free in the epilogue.
    dec = pl.reciprocal(1.0 + jnp.exp(-z), approx=True)
    dec_ref[...] = dec.astype(dec_ref.dtype)


def dsdae_forward(x, params, tile_b=512):
    """x: (B, in_dim) f32. params: list of (W, b) with W (out, in), b (out, 1), f32.

    Returns (decoded (B, in_dim) f32, encoded (B, bottleneck) f32)."""
    B, in_dim = x.shape
    bottleneck = params[2][0].shape[0]

    # Pad batch up to a multiple of the tile (padded columns are discarded afterwards).
    n_tiles = pl.cdiv(B, tile_b)
    b_pad = n_tiles * tile_b

    # Transposed, bf16 input: (in_dim, B_pad) -- batch on the lane axis.
    x_t = jnp.pad(x.astype(jnp.bfloat16).T, ((0, 0), (0, b_pad - B)))

    # Weights as bf16 MXU operands, biases stay f32.
    flat = []
    for w, b in params:
        flat.append(w.astype(jnp.bfloat16))
        flat.append(b.astype(jnp.float32))

    full_spec = lambda a: pl.BlockSpec(a.shape, lambda i: (0,) * a.ndim)
    in_specs = [pl.BlockSpec((in_dim, tile_b), lambda i: (0, i))] + \
               [full_spec(a) for a in flat]

    out_shape = (
        jax.ShapeDtypeStruct((in_dim, b_pad), jnp.float32),      # decoded^T
        jax.ShapeDtypeStruct((bottleneck, b_pad), jnp.float32),  # encoded^T
    )
    out_specs = (
        pl.BlockSpec((in_dim, tile_b), lambda i: (0, i)),
        pl.BlockSpec((bottleneck, tile_b), lambda i: (0, i)),
    )

    # Advisory cost estimate for the XLA scheduler.
    flops = sum(2 * w.shape[0] * w.shape[1] for w, _ in params) * b_pad
    bytes_accessed = (x_t.size * 2
                      + sum(w.size * 2 + b.size * 4 for w, b in params)
                      + b_pad * (in_dim + bottleneck) * 4)
    cost = pl.CostEstimate(flops=flops,
                           transcendentals=b_pad * in_dim,
                           bytes_accessed=bytes_accessed)

    dec_t, enc_t = pl.pallas_call(
        _dsdae_kernel,
        grid=(n_tiles,),
        out_shape=out_shape,
        in_specs=in_specs,
        out_specs=out_specs,
        compiler_params=pltpu.CompilerParams(dimension_semantics=("parallel",)),
        cost_estimate=cost,
    )(x_t, *flat)

    decoded = dec_t[:, :B].T
    encoded = enc_t[:, :B].T
    return decoded, encoded


def init_params(key, input_dim, hidden_dims):
    """PyTorch-style Linear init: U(-1/sqrt(fan_in), 1/sqrt(fan_in)).
    Weights stored as (out, in) (natural nn.Linear layout), biases as (out, 1)."""
    dims_enc = [input_dim] + hidden_dims                       # 32 -> 64 -> 32 -> 16
    dims_dec = list(reversed(hidden_dims)) + [input_dim]       # 16 -> 32 -> 64 -> 32
    layer_dims = list(zip(dims_enc[:-1], dims_enc[1:])) + \
                 list(zip(dims_dec[:-1], dims_dec[1:]))
    params = []
    for (fan_in, fan_out) in layer_dims:
        key, kw, kb = jax.random.split(key, 3)
        bound = 1.0 / jnp.sqrt(jnp.float32(fan_in))
        w = jax.random.uniform(kw, (fan_out, fan_in), jnp.float32, -bound, bound)
        b = jax.random.uniform(kb, (fan_out, 1), jnp.float32, -bound, bound)
        params.append((w, b))
    return params


def dsdae_reference(x, params):
    """Pure-JAX f32 reference matching the PyTorch eval-mode forward."""
    h = x
    for i in range(3):
        w, b = params[i]
        h = jnp.maximum(h @ w.T + b[:, 0], 0.0)
    enc = h
    d = enc
    for i in range(3, 5):
        w, b = params[i]
        d = jnp.maximum(d @ w.T + b[:, 0], 0.0)
    w, b = params[5]
    dec = jax.nn.sigmoid(d @ w.T + b[:, 0])
    return dec, enc


if __name__ == "__main__":
    input_dim = 32
    hidden_dims = [64, 32, 16]
    batch = 256           # small demo batch; lane-dense tiles of 128
    tile_b = 128

    key = jax.random.PRNGKey(0)
    key, kx = jax.random.split(key)
    x = jax.random.normal(kx, (batch, input_dim), jnp.float32)

    params = init_params(key, input_dim, hidden_dims)

    decoded, encoded = dsdae_forward(x, params, tile_b=tile_b)
    jax.block_until_ready((decoded, encoded))

    dec_ref, enc_ref = dsdae_reference(x, params)
    assert decoded.shape == (batch, input_dim)
    assert encoded.shape == (batch, hidden_dims[-1])
    # bf16 MXU operands + approx reciprocal in the sigmoid -> relaxed tolerance vs f32 ref.
    assert jnp.allclose(decoded, dec_ref, atol=3e-2, rtol=3e-2)
    assert jnp.allclose(encoded, enc_ref, atol=3e-2, rtol=3e-2)

    print("KERNEL_OK")
</pallas_src>

<mosaic_0001>
module attributes {stable_mosaic.version = 11 : i64} {
  func.func @_dsdae_kernel(%arg0: i32, %arg1: memref<32x128xbf16, #tpu.memory_space<vmem>>, %arg2: memref<64x32xbf16, #tpu.memory_space<vmem>>, %arg3: memref<64x1xf32, #tpu.memory_space<vmem>>, %arg4: memref<32x64xbf16, #tpu.memory_space<vmem>>, %arg5: memref<32x1xf32, #tpu.memory_space<vmem>>, %arg6: memref<16x32xbf16, #tpu.memory_space<vmem>>, %arg7: memref<16x1xf32, #tpu.memory_space<vmem>>, %arg8: memref<32x16xbf16, #tpu.memory_space<vmem>>, %arg9: memref<32x1xf32, #tpu.memory_space<vmem>>, %arg10: memref<64x32xbf16, #tpu.memory_space<vmem>>, %arg11: memref<64x1xf32, #tpu.memory_space<vmem>>, %arg12: memref<32x64xbf16, #tpu.memory_space<vmem>>, %arg13: memref<32x1xf32, #tpu.memory_space<vmem>>, %arg14: memref<32x128xf32, #tpu.memory_space<vmem>>, %arg15: memref<16x128xf32, #tpu.memory_space<vmem>>) attributes {dimension_semantics = [#tpu.dimension_semantics<parallel>], iteration_bounds = array<i64: 2>, scalar_prefetch = 0 : i64, scratch_operands = 0 : i64, tpu.core_type = #tpu.core_type<tc>, window_params = [{transform_indices = @transform_0, window_bounds = array<i64: 32, 128>}, {pipeline_mode = #tpu.pipeline_mode<synchronous>, transform_indices = @transform_1, window_bounds = array<i64: 64, 32>}, {pipeline_mode = #tpu.pipeline_mode<synchronous>, transform_indices = @transform_2, window_bounds = array<i64: 64, 1>}, {pipeline_mode = #tpu.pipeline_mode<synchronous>, transform_indices = @transform_3, window_bounds = array<i64: 32, 64>}, {pipeline_mode = #tpu.pipeline_mode<synchronous>, transform_indices = @transform_4, window_bounds = array<i64: 32, 1>}, {pipeline_mode = #tpu.pipeline_mode<synchronous>, transform_indices = @transform_5, window_bounds = array<i64: 16, 32>}, {pipeline_mode = #tpu.pipeline_mode<synchronous>, transform_indices = @transform_6, window_bounds = array<i64: 16, 1>}, {pipeline_mode = #tpu.pipeline_mode<synchronous>, transform_indices = @transform_7, window_bounds = array<i64: 32, 16>}, {pipeline_mode = #tpu.pipeline_mode<synchronous>, transform_indices = @transform_8, window_bounds = array<i64: 32, 1>}, {pipeline_mode = #tpu.pipeline_mode<synchronous>, transform_indices = @transform_9, window_bounds = array<i64: 64, 32>}, {pipeline_mode = #tpu.pipeline_mode<synchronous>, transform_indices = @transform_10, window_bounds = array<i64: 64, 1>}, {pipeline_mode = #tpu.pipeline_mode<synchronous>, transform_indices = @transform_11, window_bounds = array<i64: 32, 64>}, {pipeline_mode = #tpu.pipeline_mode<synchronous>, transform_indices = @transform_12, window_bounds = array<i64: 32, 1>}, {transform_indices = @transform_13, window_bounds = array<i64: 32, 128>}, {transform_indices = @transform_14, window_bounds = array<i64: 16, 128>}]} {
    %c0 = arith.constant 0 : index
    %c0_0 = arith.constant 0 : index
    %0 = vector.load %arg1[%c0, %c0_0] : memref<32x128xbf16, #tpu.memory_space<vmem>>, vector<32x128xbf16>
    %c0_1 = arith.constant 0 : index
    %c0_2 = arith.constant 0 : index
    %1 = vector.load %arg2[%c0_1, %c0_2] : memref<64x32xbf16, #tpu.memory_space<vmem>>, vector<64x32xbf16>
    %cst = arith.constant dense<0.000000e+00> : vector<64x128xf32>
    %2 = tpu.matmul %1, %0, %cst {dimension_numbers = #tpu.dot_dimension_numbers<[1], [0], [0], [1], [0, 0, 1, 1], [], []>} : vector<64x32xbf16>, vector<32x128xbf16>, vector<64x128xf32> -> vector<64x128xf32>
    %c0_3 = arith.constant 0 : index
    %c0_4 = arith.constant 0 : index
    %3 = vector.load %arg3[%c0_3, %c0_4] : memref<64x1xf32, #tpu.memory_space<vmem>>, vector<64x1xf32>
    %4 = vector.broadcast %3 : vector<64x1xf32> to vector<64x128xf32>
    %5 = arith.addf %2, %4 : vector<64x128xf32>
    %cst_5 = arith.constant 0.000000e+00 : f32
    %6 = vector.broadcast %cst_5 : f32 to vector<64x128xf32>
    %7 = arith.maximumf %5, %6 : vector<64x128xf32>
    %8 = arith.truncf %7 : vector<64x128xf32> to vector<64x128xbf16>
    %c0_6 = arith.constant 0 : index
    %c0_7 = arith.constant 0 : index
    %9 = vector.load %arg4[%c0_6, %c0_7] : memref<32x64xbf16, #tpu.memory_space<vmem>>, vector<32x64xbf16>
    %cst_8 = arith.constant dense<0.000000e+00> : vector<32x128xf32>
    %10 = tpu.matmul %9, %8, %cst_8 {dimension_numbers = #tpu.dot_dimension_numbers<[1], [0], [0], [1], [0, 0, 1, 1], [], []>} : vector<32x64xbf16>, vector<64x128xbf16>, vector<32x128xf32> -> vector<32x128xf32>
    %c0_9 = arith.constant 0 : index
    %c0_10 = arith.constant 0 : index
    %11 = vector.load %arg5[%c0_9, %c0_10] : memref<32x1xf32, #tpu.memory_space<vmem>>, vector<32x1xf32>
    %12 = vector.broadcast %11 : vector<32x1xf32> to vector<32x128xf32>
    %13 = arith.addf %10, %12 : vector<32x128xf32>
    %cst_11 = arith.constant 0.000000e+00 : f32
    %14 = vector.broadcast %cst_11 : f32 to vector<32x128xf32>
    %15 = arith.maximumf %13, %14 : vector<32x128xf32>
    %16 = arith.truncf %15 : vector<32x128xf32> to vector<32x128xbf16>
    %c0_12 = arith.constant 0 : index
    %c0_13 = arith.constant 0 : index
    %17 = vector.load %arg6[%c0_12, %c0_13] : memref<16x32xbf16, #tpu.memory_space<vmem>>, vector<16x32xbf16>
    %cst_14 = arith.constant dense<0.000000e+00> : vector<16x128xf32>
    %18 = tpu.matmul %17, %16, %cst_14 {dimension_numbers = #tpu.dot_dimension_numbers<[1], [0], [0], [1], [0, 0, 1, 1], [], []>} : vector<16x32xbf16>, vector<32x128xbf16>, vector<16x128xf32> -> vector<16x128xf32>
    %c0_15 = arith.constant 0 : index
    %c0_16 = arith.constant 0 : index
    %19 = vector.load %arg7[%c0_15, %c0_16] : memref<16x1xf32, #tpu.memory_space<vmem>>, vector<16x1xf32>
    %20 = vector.broadcast %19 : vector<16x1xf32> to vector<16x128xf32>
    %21 = arith.addf %18, %20 : vector<16x128xf32>
    %cst_17 = arith.constant 0.000000e+00 : f32
    %22 = vector.broadcast %cst_17 : f32 to vector<16x128xf32>
    %23 = arith.maximumf %21, %22 : vector<16x128xf32>
    %c0_18 = arith.constant 0 : index
    %c0_19 = arith.constant 0 : index
    %24 = vector.load %arg15[%c0_18, %c0_19] : memref<16x128xf32, #tpu.memory_space<vmem>>, vector<16x128xf32>
    tpu.vector_store %arg15[%c0_18, %c0_19], %23 {strides = array<i32>} : memref<16x128xf32, #tpu.memory_space<vmem>>, vector<16x128xf32>,
    %25 = arith.truncf %23 : vector<16x128xf32> to vector<16x128xbf16>
    %c0_20 = arith.constant 0 : index
    %c0_21 = arith.constant 0 : index
    %26 = vector.load %arg8[%c0_20, %c0_21] : memref<32x16xbf16, #tpu.memory_space<vmem>>, vector<32x16xbf16>
    %cst_22 = arith.constant dense<0.000000e+00> : vector<32x128xf32>
    %27 = tpu.matmul %26, %25, %cst_22 {dimension_numbers = #tpu.dot_dimension_numbers<[1], [0], [0], [1], [0, 0, 1, 1], [], []>} : vector<32x16xbf16>, vector<16x128xbf16>, vector<32x128xf32> -> vector<32x128xf32>
    %c0_23 = arith.constant 0 : index
    %c0_24 = arith.constant 0 : index
    %28 = vector.load %arg9[%c0_23, %c0_24] : memref<32x1xf32, #tpu.memory_space<vmem>>, vector<32x1xf32>
    %29 = vector.broadcast %28 : vector<32x1xf32> to vector<32x128xf32>
    %30 = arith.addf %27, %29 : vector<32x128xf32>
    %cst_25 = arith.constant 0.000000e+00 : f32
    %31 = vector.broadcast %cst_25 : f32 to vector<32x128xf32>
    %32 = arith.maximumf %30, %31 : vector<32x128xf32>
    %33 = arith.truncf %32 : vector<32x128xf32> to vector<32x128xbf16>
    %c0_26 = arith.constant 0 : index
    %c0_27 = arith.constant 0 : index
    %34 = vector.load %arg10[%c0_26, %c0_27] : memref<64x32xbf16, #tpu.memory_space<vmem>>, vector<64x32xbf16>
    %cst_28 = arith.constant dense<0.000000e+00> : vector<64x128xf32>
    %35 = tpu.matmul %34, %33, %cst_28 {dimension_numbers = #tpu.dot_dimension_numbers<[1], [0], [0], [1], [0, 0, 1, 1], [], []>} : vector<64x32xbf16>, vector<32x128xbf16>, vector<64x128xf32> -> vector<64x128xf32>
    %c0_29 = arith.constant 0 : index
    %c0_30 = arith.constant 0 : index
    %36 = vector.load %arg11[%c0_29, %c0_30] : memref<64x1xf32, #tpu.memory_space<vmem>>, vector<64x1xf32>
    %37 = vector.broadcast %36 : vector<64x1xf32> to vector<64x128xf32>
    %38 = arith.addf %35, %37 : vector<64x128xf32>
    %cst_31 = arith.constant 0.000000e+00 : f32
    %39 = vector.broadcast %cst_31 : f32 to vector<64x128xf32>
    %40 = arith.maximumf %38, %39 : vector<64x128xf32>
    %c0_32 = arith.constant 0 : index
    %c0_33 = arith.constant 0 : index
    %41 = vector.load %arg12[%c0_32, %c0_33] : memref<32x64xbf16, #tpu.memory_space<vmem>>, vector<32x64xbf16>
    %42 = arith.truncf %40 : vector<64x128xf32> to vector<64x128xbf16>
    %cst_34 = arith.constant dense<0.000000e+00> : vector<32x128xf32>
    %43 = tpu.matmul %41, %42, %cst_34 {dimension_numbers = #tpu.dot_dimension_numbers<[1], [0], [0], [1], [0, 0, 1, 1], [], []>} : vector<32x64xbf16>, vector<64x128xbf16>, vector<32x128xf32> -> vector<32x128xf32>
    %c0_35 = arith.constant 0 : index
    %c0_36 = arith.constant 0 : index
    %44 = vector.load %arg13[%c0_35, %c0_36] : memref<32x1xf32, #tpu.memory_space<vmem>>, vector<32x1xf32>
    %45 = vector.broadcast %44 : vector<32x1xf32> to vector<32x128xf32>
    %46 = arith.addf %43, %45 : vector<32x128xf32>
    %cst_37 = arith.constant 0.000000e+00 : f32
    %47 = vector.broadcast %cst_37 : f32 to vector<32x128xf32>
    %48 = arith.subf %47, %46 : vector<32x128xf32>
    %49 = math.exp %48 : vector<32x128xf32>
    %cst_38 = arith.constant 1.000000e+00 : f32
    %50 = vector.broadcast %cst_38 : f32 to vector<32x128xf32>
    %51 = arith.addf %50, %49 : vector<32x128xf32>
    %52 = tpu.reciprocal %51 {approx = true} : vector<32x128xf32> -> vector<32x128xf32>
    %c0_39 = arith.constant 0 : index
    %c0_40 = arith.constant 0 : index
    %53 = vector.load %arg14[%c0_39, %c0_40] : memref<32x128xf32, #tpu.memory_space<vmem>>, vector<32x128xf32>
    tpu.vector_store %arg14[%c0_39, %c0_40], %52 {strides = array<i32>} : memref<32x128xf32, #tpu.memory_space<vmem>>, vector<32x128xf32>,
    return
  }
  func.func @transform_0(%arg0: i32) -> (i32, i32) {
    %c0_i32 = arith.constant 0 : i32
    %c0_i32_0 = arith.constant 0 : i32
    return %c0_i32, %arg0 : i32, i32
  }
  func.func @transform_1(%arg0: i32) -> (i32, i32) {
    %c0_i32 = arith.constant 0 : i32
    %c0_i32_0 = arith.constant 0 : i32
    %c0_i32_1 = arith.constant 0 : i32
    return %c0_i32, %c0_i32_0 : i32, i32
  }
  func.func @transform_2(%arg0: i32) -> (i32, i32) {
    %c0_i32 = arith.constant 0 : i32
    %c0_i32_0 = arith.constant 0 : i32
    %c0_i32_1 = arith.constant 0 : i32
    return %c0_i32, %c0_i32_0 : i32, i32
  }
  func.func @transform_3(%arg0: i32) -> (i32, i32) {
    %c0_i32 = arith.constant 0 : i32
    %c0_i32_0 = arith.constant 0 : i32
    %c0_i32_1 = arith.constant 0 : i32
    return %c0_i32, %c0_i32_0 : i32, i32
  }
  func.func @transform_4(%arg0: i32) -> (i32, i32) {
    %c0_i32 = arith.constant 0 : i32
    %c0_i32_0 = arith.constant 0 : i32
    %c0_i32_1 = arith.constant 0 : i32
    return %c0_i32, %c0_i32_0 : i32, i32
  }
  func.func @transform_5(%arg0: i32) -> (i32, i32) {
    %c0_i32 = arith.constant 0 : i32
    %c0_i32_0 = arith.constant 0 : i32
    %c0_i32_1 = arith.constant 0 : i32
    return %c0_i32, %c0_i32_0 : i32, i32
  }
  func.func @transform_6(%arg0: i32) -> (i32, i32) {
    %c0_i32 = arith.constant 0 : i32
    %c0_i32_0 = arith.constant 0 : i32
    %c0_i32_1 = arith.constant 0 : i32
    return %c0_i32, %c0_i32_0 : i32, i32
  }
  func.func @transform_7(%arg0: i32) -> (i32, i32) {
    %c0_i32 = arith.constant 0 : i32
    %c0_i32_0 = arith.constant 0 : i32
    %c0_i32_1 = arith.constant 0 : i32
    return %c0_i32, %c0_i32_0 : i32, i32
  }
  func.func @transform_8(%arg0: i32) -> (i32, i32) {
    %c0_i32 = arith.constant 0 : i32
    %c0_i32_0 = arith.constant 0 : i32
    %c0_i32_1 = arith.constant 0 : i32
    return %c0_i32, %c0_i32_0 : i32, i32
  }
  func.func @transform_9(%arg0: i32) -> (i32, i32) {
    %c0_i32 = arith.constant 0 : i32
    %c0_i32_0 = arith.constant 0 : i32
    %c0_i32_1 = arith.constant 0 : i32
    return %c0_i32, %c0_i32_0 : i32, i32
  }
  func.func @transform_10(%arg0: i32) -> (i32, i32) {
    %c0_i32 = arith.constant 0 : i32
    %c0_i32_0 = arith.constant 0 : i32
    %c0_i32_1 = arith.constant 0 : i32
    return %c0_i32, %c0_i32_0 : i32, i32
  }
  func.func @transform_11(%arg0: i32) -> (i32, i32) {
    %c0_i32 = arith.constant 0 : i32
    %c0_i32_0 = arith.constant 0 : i32
    %c0_i32_1 = arith.constant 0 : i32
    return %c0_i32, %c0_i32_0 : i32, i32
  }
  func.func @transform_12(%arg0: i32) -> (i32, i32) {
    %c0_i32 = arith.constant 0 : i32
    %c0_i32_0 = arith.constant 0 : i32
    %c0_i32_1 = arith.constant 0 : i32
    return %c0_i32, %c0_i32_0 : i32, i32
  }
  func.func @transform_13(%arg0: i32) -> (i32, i32) {
    %c0_i32 = arith.constant 0 : i32
    %c0_i32_0 = arith.constant 0 : i32
    return %c0_i32, %arg0 : i32, i32
  }
  func.func @transform_14(%arg0: i32) -> (i32, i32) {
    %c0_i32 = arith.constant 0 : i32
    %c0_i32_0 = arith.constant 0 : i32
    return %c0_i32, %arg0 : i32, i32
  }
}

</mosaic_0001>

<bundles_post_ra>
// kernel: tpu_custom_call.1
= control target key start
LH: loop header
LB: loop body
LE: loop exit
PB: predicated region body
PF: predicated region fallthrough
CT: control target
= control target key end

     0   :  { %s1846_s0 = inlined_call_operand.vmem [shape: bf16[32,256], index: 0, kind: input, shape index: {}]   ;;  %s1847_s1 = inlined_call_operand.vmem [shape: bf16[64,32], index: 1, kind: input, shape index: {}]   ;;  %s1848_s2 = inlined_call_operand.vmem [shape: f32[64,1], index: 2, kind: input, shape index: {}]   ;;  %s1849_s3 = inlined_call_operand.vmem [shape: bf16[32,64], index: 3, kind: input, shape index: {}]   ;;  %s1850_s4 = inlined_call_operand.vmem [shape: f32[32,1], index: 4, kind: input, shape index: {}]   ;;  %s1851_s5 = inlined_call_operand.vmem [shape: bf16[16,32], index: 5, kind: input, shape index: {}]   ;;  %s1852_s6 = inlined_call_operand.vmem [shape: f32[16,1], index: 6, kind: input, shape index: {}]   ;;  %s1853_s7 = inlined_call_operand.vmem [shape: bf16[32,16], index: 7, kind: input, shape index: {}]   ;;  %s1854_s8 = inlined_call_operand.vmem [shape: f32[32,1], index: 8, kind: input, shape index: {}]   ;;  %s1855_s9 = inlined_call_operand.vmem [shape: bf16[64,32], index: 9, kind: input, shape index: {}]   ;;  %s1856_s10 = inlined_call_operand.vmem [shape: f32[64,1], index: 10, kind: input, shape index: {}]   ;;  %s1857_s11 = inlined_call_operand.vmem [shape: bf16[32,64], index: 11, kind: input, shape index: {}]   ;;  %s1858_s12 = inlined_call_operand.vmem [shape: f32[32,1], index: 12, kind: input, shape index: {}]   ;;  %s1859_s13 = inlined_call_operand.hbm [shape: f32[32,256], index: 13, kind: output, shape index: {0}]   ;;  %s1860_s14 = inlined_call_operand.hbm [shape: f32[16,256], index: 14, kind: output, shape index: {1}]  }
   0x1   :  { %1865 = sst [smem:[#allocation11_spill]] %s1846_s0 }
   0x2   :  { %1866 = sst [smem:[#allocation12_spill]] %s1847_s1 }
   0x3   :  { %1867 = sst [smem:[#allocation13_spill]] %s1848_s2 }
   0x4   :  { %1868 = sst [smem:[#allocation14_spill]] %s1849_s3 }
   0x5   :  { %1869 = sst [smem:[#allocation15_spill]] %s1850_s4 }
   0x6   :  { %20 = vsyncpa [#allocation4], 0 }
   0x7   :  { %22 = vsyncpa [#allocation4 + $0x1], 0 }
   0x8   :  { %23 = vsyncpa [#allocation6], 0 }
   0x9   :  { %25 = vsyncpa [#allocation6 + $0x1], 0  ;;  %s1570_s29 = smov 0   ;;  %s1572_s30 = smov 0  }
   0xa   :  { %s1574_s15 = smov 0   ;;  %s1576_s16 = smov 0  }
   0xb LB: > { %1870 = sst [smem:[#allocation9_spill]] %s1485_s15  ;;  %s1861_s17 = sadd.s32 4294967295, %s1489_s16   ;;  %s1489_s16 = sphi %s1576_s16, %s1886_s16   ;;  %s1485_s15 = sphi %s1574_s15, %s1883_s15   ;;  %s1481_s30 = sphi %s1572_s30, %s1885_s30   ;;  %s1477_s29 = sphi %s1570_s29, %s1884_s29  }
   0xc   : > { %s1213_s18 = sadd.s32 4294967294, %s1489_s16   ;;  %s1593_s19 = sadd.s32 1, %s1489_s16  }
   0xd   : > { %s38_s20 = sadd.s32 1, %s1485_s15  ;;  %s35_s21 = ssub.s32 %s1489_s16, %s1593_s19 }
   0xe   : > { %p45_p0 = scmp.ne.s32.totalorder %s1485_s15, %s1481_s30  ;;  %p36_p1 = scmp.eq.s32.totalorder %s35_s21, 0 }
   0xf   : > { %p46_p2 = scmp.eq.s32.totalorder %s1489_s16, 0  ;;  %p327_p3 = scmp.eq.s32.totalorder %s1861_s17, 1 }
  0x10   : > { %p332_p4 = scmp.ne.s32.totalorder %s1481_s30, %s1477_s29  ;;  %p333_p7 = scmp.eq.s32.totalorder %s1213_s18, 1 }
  0x11   : > { %s1606_s22 = scalar_select %p36_p1, %s1485_s15, %s38_s20  }
  0x12   : > { %p47_p5 = por %p46_p2, %p45_p0  ;;  %p1608_p6 = por %p327_p3, %p45_p0 }
  0x13   : > { %1871 = sst [smem:[#allocation10_spill]] %s1606_s22  ;;  %p1612_p8 = por %p333_p7, %p332_p4 }
  0x14   : > { %p1215_p9 = scmp.ge.s32.totalorder %s1489_s16, 2 }
  0x16   : > { %411 = sbr.rel (%p1215_p9) target bundleno = 41 (0x29), region = 64 }
  0x1b   : > { %414 = sbr.rel (!%p47_p5) target bundleno = 41 (0x29), region = 68  ;;  %s416_s25 = sand.u32 (%p47_p5), 1, %s1485_s15  }
  0x1c   : > { %s1217_s26 = sshll.u32 (%p47_p5), %s1489_s16, 2  ;;  %s1216_s27 = sshll.u32 (%p47_p5), %s416_s25, 4 }
  0x1d   : > { %s1874_s0 = sld [smem:[#allocation11_spill]] (%p47_p5)  ;;  %s418_s18 = scalar_lea.vmem (%p47_p5), [#allocation2], %s1216_s27 }
  0x23   : > { %s420_s21 = scalar_lea.vmem %s1874_s0, %s1217_s26 }
  0x24   : > { %v437_v0 = vld [vmem:[%s420_s21] sm:$0xf]  ;;  %v439_v1 = vld [vmem:[%s420_s21 + $0x8] sm:$0xf]  ;;  %v441_v2 = vld [vmem:[%s420_s21 + $0x10] sm:$0xf] }
  0x25   : > { %438 = vst [vmem:[%s418_s18] sm:$0xf] %v437_v0  ;;  %v443_v3 = vld [vmem:[%s420_s21 + $0x18] sm:$0xf] }
  0x26   : > { %440 = vst [vmem:[%s418_s18 + $0x4] sm:$0xf] %v439_v1 }
  0x27   : > { %442 = vst [vmem:[%s418_s18 + $0x8] sm:$0xf] %v441_v2 }
  0x28   : > { %444 = vst [vmem:[%s418_s18 + $0xc] sm:$0xf] %v443_v3 }
  0x29 PF: > { %p1218_p10 = scmp.ge.s32.totalorder %s1489_s16, 1  ;;  %p475_p11 = scmp.lt.s32.totalorder %s1489_s16, 3 }
  0x2b   : > { %p476_p12 = pnand %p1218_p10, %p475_p11 }
  0x2c   : > { %s1875_s2 = sld [smem:[#allocation13_spill]] (!%p476_p12)  ;;  %s1633_s20 = sand.u32 (!%p476_p12), 1, %s1481_s30  }
  0x2d   : > { %479 = sbr.rel (%p476_p12) target bundleno = 1130 (0x46a), region = 109  ;;  %s1863_s21 = sshll.u32 (!%p476_p12), %s1633_s20, 4 }
  0x2e   : > { %s484_s18 = scalar_lea.vmem (!%p476_p12), [#allocation2], %s1863_s21  ;;  %s1876_s1 = sld [smem:[#allocation12_spill]] (!%p476_p12) }
  0x2f   : > { %s1877_s4 = sld [smem:[#allocation15_spill]] (!%p476_p12)  ;;  %s1415_s25 = scalar_lea.hbm (!%p476_p12), %s1860_s14, 32 }
  0x30   : > { %s1878_s3 = sld [smem:[#allocation14_spill]] (!%p476_p12) }
  0x32   : > { %v551_v4 = vld [vmem:[%s1875_s2 + $0x30] sm:$0xff]  ;;  %v549_v5 = vld [vmem:[%s1875_s2 + $0x20] sm:$0xff]  ;;  %v1491_v6 = vmov 0   ;;  %v1312_v7 = vld [vmem:[%s484_s18 + $0x8] sm:$0xff]  ;;  %vm625_vm0 = vcmask 261120   ;;  %vm717_vm1 = vcmask 523264  }
  0x33   : > { %1376 = vset.pattern.permute.xlu0 %v1491_v6  ;;  %1377 = vset.pattern.permute.xlu1 %v1491_v6  ;;  %v547_v8 = vld [vmem:[%s1875_s2 + $0x10] sm:$0xff]  ;;  %v552_v10 = vld [vmem:[%s1875_s2 + $0x38] sm:$0xff]  ;;  %v550_v11 = vld [vmem:[%s1875_s2 + $0x28] sm:$0xff]  ;;  %vm828_vm2 = vcmask 130048  }
  0x34   : > { %585 = vperm.xlu0 %1376, %v551_v4   ;;  %575 = vperm.xlu1 %1377, %v549_v5   ;;  %v1311_v9 = vld [vmem:[%s484_s18] sm:$0xff]  ;;  %v548_v13 = vld [vmem:[%s1875_s2 + $0x18] sm:$0xff]  ;;  %v546_v15 = vld [vmem:[%s1875_s2 + $0x8] sm:$0xff]  ;;  %s1879_s18 = sshll.u32 %s1633_s20, 4 }
  0x35   : > { %1378 = vset.pattern.permute.xlu2 %v1491_v6  ;;  %644 = vmatpush.bf16.msra.mxu0 %v1312_v7  ;;  %v1313_v12 = vld [vmem:[%s1876_s1] sm:$0xff]  ;;  %v685_v16 = vld [vmem:[%s1877_s4 + $0x10] sm:$0xff]  ;;  %v686_v17 = vld [vmem:[%s1877_s4 + $0x18] sm:$0xff]  ;;  %s1752_s26 = scalar_lea.vmem [#allocation5], %s1879_s18  ;;  %s1880_s18 = sadd.s32 4294967295, %s1489_s16  }
  0x36   : > { %565 = vperm.xlu2 %1378, %v547_v8   ;;  %v545_v14 = vld [vmem:[%s1875_s2] sm:$0xff]  ;;  %v1314_v19 = vld [vmem:[%s1876_s1 + $0x8] sm:$0xff]  ;;  %v796_v23 = vld [vmem:[%s1854_s8 + $0x10] sm:$0xff]  ;;  %s1109_s28 = sshll.u32 %s1752_s26, 4  ;;  %s1789_s0 = sshll.u32 %s1880_s18, 3  ;;  %s1110_s28 = int_to_ptr.vmem [resolvable:$true] %s1109_s28 }
  0x37   : > { %v683_v18 = vld [vmem:[%s1877_s4] sm:$0xff]  ;;  %v684_v20 = vld [vmem:[%s1877_s4 + $0x8] sm:$0xff]  ;;  %v797_v24 = vld [vmem:[%s1854_s8 + $0x18] sm:$0xff]  ;;  %s1108_s22 = scalar_lea.hbm %s1860_s14, %s1789_s0 }
  0x38   : > { %v751_v21 = vld [vmem:[%s1852_s6] sm:$0xff]  ;;  %v752_v22 = vld [vmem:[%s1852_s6 + $0x8] sm:$0xff]  ;;  %v1315_v26 = vld [vmem:[%s1876_s1 + $0x10] sm:$0xff]  ;;  %s1111_s27 = sshll.u32 %s1108_s22, 4  ;;  %s1112_s27 = int_to_ptr.hbm [resolvable:$true] %s1111_s27 }
  0x39   : > { %645 = vmatpush.bf16.msra.mxu0 %v1311_v9  ;;  %v794_v25 = vld [vmem:[%s1854_s8] sm:$0xff]  ;;  %v795_v27 = vld [vmem:[%s1854_s8 + $0x8] sm:$0xff]  ;;  %v874_v28 = vld [vmem:[%s1856_s10 + $0x30] sm:$0xff]  ;;  %s1409_s2 = sshra.s32 %s1112_s27, 4  ;;  %s1410_s2 = int_to_ptr.hbm [resolvable:$true] %s1409_s2 }
  0x3a   : > { %v875_v29 = vld [vmem:[%s1856_s10 + $0x38] sm:$0xff]  ;;  %v872_v30 = vld [vmem:[%s1856_s10 + $0x20] sm:$0xff]  ;;  %v873_v31 = vld [vmem:[%s1856_s10 + $0x28] sm:$0xff]  ;;  %p1416_p2 = scmp.lt.s32.totalorder %s1410_s2, %s1860_s14 }
  0x3b   : > { %v870_v32 = vld [vmem:[%s1856_s10 + $0x10] sm:$0xff]  ;;  %v1316_v33 = vld [vmem:[%s1876_s1 + $0x18] sm:$0xff]  ;;  %v868_v35 = vld [vmem:[%s1856_s10] sm:$0xff]  ;;  %s1082_s1 = scalar_lea.sflag [#allocation6], %s1633_s20 }
  0x3c   : > { %590 = vperm.xlu0 %1376, %v552_v10   ;;  %580 = vperm.xlu1 %1377, %v550_v11   ;;  %v871_v34 = vld [vmem:[%s1856_s10 + $0x18] sm:$0xff]  ;;  %v869_v36 = vld [vmem:[%s1856_s10 + $0x8] sm:$0xff]  ;;  %v993_v37 = vld [vmem:[%s1858_s12] sm:$0xff] }
  0x3d   : > { %1246 = vmatmul.msk.bf16.vlgmr.msra.gmra.mxu0 %vm625_vm0, %v1313_v12  ;;  %v994_v38 = vld [vmem:[%s1858_s12 + $0x8] sm:$0xff]  ;;  %v995_v39 = vld [vmem:[%s1858_s12 + $0x10] sm:$0xff]  ;;  %v996_v40 = vld [vmem:[%s1858_s12 + $0x18] sm:$0xff] }
  0x3e   : > { %570 = vperm.xlu2 %1378, %v548_v13   ;;  %v1317_v13 = vld [vmem:[%s1878_s3] sm:$0xff] }
  0x44   : > { %555 = vperm.xlu0 %1376, %v545_v14   ;;  %560 = vperm.xlu1 %1377, %v546_v15   ;;  %v1318_v14 = vld [vmem:[%s1878_s3 + $0x8] sm:$0xff]  ;;  %s1411_s3 = scalar_lea.hbm %s1410_s2, 16 }
  0x45   : > { %p1412_p13 = scmp.ne.s32.totalorder %s1410_s2, %s1411_s3  ;;  %p1417_p3 = scmp.lt.s32.totalorder %s1415_s25, %s1411_s3 }
  0x46   : > { %699 = vperm.xlu2 %1378, %v685_v16  }
  0x47   : > { %p1413_p0 = pnand %p1412_p13, %p1608_p6  ;;  %p1418_p4 = por %p1417_p3, %p1416_p2 }
  0x49   : > { %p1414_p1 = pneg %p1413_p0 }
  0x4b   : > { %p1419_p5 = pnand %p1418_p4, %p1414_p1 }
  0x4c   : > { %704 = vperm.xlu0 %1376, %v686_v17   ;;  %689 = vperm.xlu1 %1377, %v683_v18  }
  0x4d   : > { %1247 = vmatmul.msk.bf16.gmra.mxu0 %vm625_vm0, %v1314_v19 }
  0x4e   : > { %694 = vperm.xlu2 %1378, %v684_v20  }
  0x54   : > { %755 = vperm.xlu0 %1376, %v751_v21   ;;  %760 = vperm.xlu1 %1377, %v752_v22  }
  0x56   : > { %810 = vperm.xlu2 %1378, %v796_v23  }
  0x5c   : > { %815 = vperm.xlu0 %1376, %v797_v24   ;;  %800 = vperm.xlu1 %1377, %v794_v25  }
  0x5d   : > { %1248 = vmatmul.msk.bf16.gmra.mxu0 %vm625_vm0, %v1315_v26 }
  0x5e   : > { %805 = vperm.xlu2 %1378, %v795_v27  }
  0x64   : > { %908 = vperm.xlu0 %1376, %v874_v28   ;;  %913 = vperm.xlu1 %1377, %v875_v29  }
  0x66   : > { %898 = vperm.xlu2 %1378, %v872_v30  }
  0x6c   : > { %903 = vperm.xlu0 %1376, %v873_v31   ;;  %888 = vperm.xlu1 %1377, %v870_v32  }
  0x6d   : > { %1249 = vmatmul.msk.bf16.gmra.mxu0 %vm625_vm0, %v1316_v33  ;;  %v1319_v33 = vld [vmem:[%s1851_s5] sm:$0xff] }
  0x6e   : > { %893 = vperm.xlu2 %1378, %v871_v34  }
  0x74   : > { %878 = vperm.xlu0 %1376, %v868_v35   ;;  %883 = vperm.xlu1 %1377, %v869_v36  }
  0x76   : > { %999 = vperm.xlu2 %1378, %v993_v37  }
  0x7c   : > { %1004 = vperm.xlu0 %1376, %v994_v38   ;;  %1009 = vperm.xlu1 %1377, %v995_v39  }
  0x7e   : > { %1014 = vperm.xlu2 %1378, %v996_v40  }
  0x90   : > { %v566_v50 = vpop.permute.xlu2 %565 }
  0x98   : > { %v571_v60 = vpop.permute.xlu2 %570 }
  0xa0   : > { %v700_v17 = vpop.permute.xlu2 %699 }
  0xa6   : > { %v576_v47 = vpop.permute.xlu1 %575  ;;  %v586_v48 = vpop.permute.xlu0 %585 }
  0xa8   : > { %v695_v19 = vpop.permute.xlu2 %694 }
  0xae   : > { %v581_v51 = vpop.permute.xlu1 %580  ;;  %v591_v53 = vpop.permute.xlu0 %590 }
  0xb6   : > { %v561_v2 = vpop.permute.xlu1 %560  ;;  %v556_v6 = vpop.permute.xlu0 %555 }
  0xba   : > { %v647_v41 = vpop.f32.mrf.mxu0 }
  0xbb   : > { %v648_v7 = vadd.f32 %v647_v41, %v556_v6 }
  0xbd   : > { %v667_v11 = vmax.f32 %v648_v7, 0.0 }
  0xbe   : > { %v705_v21 = vpop.permute.xlu0 %704  ;;  %v690_v25 = vpop.permute.xlu1 %689 }
  0xc2   : > { %v649_v42 = vpop.f32.mrf.mxu0 }
  0xc3   : > { %v650_v3 = vadd.f32 %v649_v42, %v561_v2  ;;  %v1325_v2 = vld [vmem:[%s1855_s9 + $0x18] sm:$0xff] }
  0xc5   : > { %v668_v9 = vmax.f32 %v650_v3, 0.0 }
  0xc6   : > { %v756_v34 = vpop.permute.xlu0 %755  ;;  %v761_v38 = vpop.permute.xlu1 %760 }
  0xc7   : > { %v675_v12 = vpack.c.bf16 %v668_v9, %v667_v11 }
  0xca   : > { %v652_v43 = vpop.f32.mrf.mxu0 }
  0xcb   : > { %v653_v0 = vadd.f32 %v652_v43, %v566_v50  ;;  %v1320_v43 = vld [vmem:[%s1853_s7] sm:$0xff] }
  0xcd   : > { %v669_v8 = vmax.f32 %v653_v0, 0.0  ;;  %v1323_v0 = vld [vmem:[%s1855_s9 + $0x8] sm:$0xff] }
  0xd2   : > { %v654_v44 = vpop.f32.mrf.mxu0 }
  0xd3   : > { %v655_v61 = vadd.f32 %v654_v44, %v571_v60  ;;  %v1321_v44 = vld [vmem:[%s1853_s7 + $0x8] sm:$0xff] }
  0xd5   : > { %v670_v4 = vmax.f32 %v655_v61, 0.0 }
  0xd7   : > { %v676_v10 = vpack.c.bf16 %v670_v4, %v669_v8 }
  0xda   : > { %v657_v45 = vpop.f32.mrf.mxu0 }
  0xdb   : > { %v658_v57 = vadd.f32 %v657_v45, %v576_v47  ;;  %v811_v47 = vpop.permute.xlu2 %810 }
  0xdd   : > { %v671_v1 = vmax.f32 %v658_v57, 0.0 }
  0xe2   : > { %v659_v46 = vpop.f32.mrf.mxu0 }
  0xe3   : > { %v660_v55 = vadd.f32 %v659_v46, %v581_v51  ;;  %v816_v51 = vpop.permute.xlu0 %815 }
  0xe5   : > { %v672_v62 = vmax.f32 %v660_v55, 0.0  ;;  %v801_v55 = vpop.permute.xlu1 %800 }
  0xe7   : > { %v677_v5 = vpack.c.bf16 %v672_v62, %v671_v1  ;;  %v1324_v1 = vld [vmem:[%s1855_s9 + $0x10] sm:$0xff] }
  0xea   : > { %v662_v49 = vpop.f32.mrf.mxu0 }
  0xeb   : > { %v663_v52 = vadd.f32 %v662_v49, %v586_v48  ;;  %v806_v49 = vpop.permute.xlu2 %805 }
  0xed   : > { %v673_v58 = vmax.f32 %v663_v52, 0.0  ;;  %v914_v9 = vpop.permute.xlu1 %913 }
  0xf2   : > { %v664_v54 = vpop.f32.mrf.mxu0 }
  0xf3   : > { %v665_v56 = vadd.f32 %v664_v54, %v591_v53 }
  0xf5   : > { %v674_v59 = vmax.f32 %v665_v56, 0.0 }
  0xf7   : > { %v678_v63 = vpack.c.bf16 %v674_v59, %v673_v58 }
  0xf9   : > { %728 = vmatpush.bf16.msra.mxu1 %v678_v63  ;;  %v1322_v63 = vld [vmem:[%s1855_s9] sm:$0xff] }
  0xfd   : > { %729 = vmatpush.bf16.msra.mxu1 %v677_v5 }
 0x101   : > { %730 = vmatpush.bf16.msra.mxu1 %v676_v10  ;;  %v909_v10 = vpop.permute.xlu0 %908 }
 0x105   : > { %731 = vmatpush.bf16.msra.mxu1 %v675_v12  ;;  %v899_v12 = vpop.permute.xlu2 %898 }
 0x108   : > { %1258 = vmatmul.msk.bf16.vlgmr.msra.gmra.mxu1 %vm717_vm1, %v1317_v13  ;;  %v889_v13 = vpop.permute.xlu1 %888 }
 0x118   : > { %1259 = vmatmul.msk.bf16.gmra.mxu1 %vm717_vm1, %v1318_v14 }
 0x185   : > { %v733_v15 = vpop.f32.mrf.mxu1 }
 0x186   : > { %v734_v26 = vadd.f32 %v733_v15, %v690_v25  ;;  %v904_v15 = vpop.permute.xlu0 %903 }
 0x188   : > { %v743_v31 = vmax.f32 %v734_v26, 0.0 }
 0x18d   : > { %v735_v16 = vpop.f32.mrf.mxu1 }
 0x18e   : > { %v736_v23 = vadd.f32 %v735_v16, %v695_v19 }
 0x190   : > { %v744_v29 = vmax.f32 %v736_v23, 0.0 }
 0x192   : > { %v747_v32 = vpack.c.bf16 %v744_v29, %v743_v31 }
 0x195   : > { %v738_v18 = vpop.f32.mrf.mxu1 }
 0x196   : > { %v739_v20 = vadd.f32 %v738_v18, %v700_v17 }
 0x198   : > { %v745_v27 = vmax.f32 %v739_v20, 0.0 }
 0x19d   : > { %v740_v22 = vpop.f32.mrf.mxu1 }
 0x19e   : > { %v741_v24 = vadd.f32 %v740_v22, %v705_v21  ;;  %v894_v22 = vpop.permute.xlu2 %893 }
 0x1a0   : > { %v746_v28 = vmax.f32 %v741_v24, 0.0 }
 0x1a2   : > { %v748_v30 = vpack.c.bf16 %v746_v28, %v745_v27  ;;  %v884_v28 = vpop.permute.xlu1 %883 }
 0x1a4   : > { %777 = vmatpush.bf16.msrb.mxu1 %v748_v30 }
 0x1a8   : > { %778 = vmatpush.bf16.msrb.mxu1 %v747_v32  ;;  %v879_v32 = vpop.permute.xlu0 %878 }
 0x1ab   : > { %1264 = vmatmul.msk.bf16.vlgmr.msrb.gmra.mxu1 %vm625_vm0, %v1319_v33 }
 0x228   : > { %v780_v35 = vpop.f32.mrf.mxu1 }
 0x229   : > { %v781_v36 = vadd.f32 %v780_v35, %v756_v34 }
 0x22b   : > { %v785_v37 = vmax.f32 %v781_v36, 0.0 }
 0x22d   : > { %787 = vst [vmem:[%s1752_s26] sm:$0xff] %v785_v37 }
 0x230   : > { %v782_v39 = vpop.f32.mrf.mxu1 }
 0x231   : > { %v783_v40 = vadd.f32 %v782_v39, %v761_v38  ;;  %v1326_v39 = vld [vmem:[%s1857_s11] sm:$0xff] }
 0x233   : > { %v786_v41 = vmax.f32 %v783_v40, 0.0  ;;  %v1327_v40 = vld [vmem:[%s1857_s11 + $0x8] sm:$0xff] }
 0x235   : > { %788 = vst [vmem:[%s1752_s26 + $0x8] sm:$0xff] %v786_v41  ;;  %v789_v42 = vpack.c.bf16 %v786_v41, %v785_v37 }
 0x237   : > { %842 = vmatpush.bf16.msra.mxu3 %v789_v42 }
 0x23a   : > { %1273 = vmatmul.msk.bf16.vlgmr.msra.gmra.mxu3 %vm828_vm2, %v1320_v43 }
 0x24a   : > { %1274 = vmatmul.msk.bf16.gmra.mxu3 %vm828_vm2, %v1321_v44 }
 0x2bd   : > { %v844_v45 = vpop.f32.mrf.mxu3 }
 0x2be   : > { %v845_v56 = vadd.f32 %v844_v45, %v801_v55 }
 0x2c0   : > { %v854_v61 = vmax.f32 %v845_v56, 0.0 }
 0x2c5   : > { %v846_v46 = vpop.f32.mrf.mxu3 }
 0x2c6   : > { %v847_v53 = vadd.f32 %v846_v46, %v806_v49 }
 0x2c8   : > { %v855_v59 = vmax.f32 %v847_v53, 0.0 }
 0x2ca   : > { %v858_v62 = vpack.c.bf16 %v855_v59, %v854_v61 }
 0x2cd   : > { %v849_v48 = vpop.f32.mrf.mxu3 }
 0x2ce   : > { %v850_v50 = vadd.f32 %v849_v48, %v811_v47 }
 0x2d0   : > { %v856_v57 = vmax.f32 %v850_v50, 0.0 }
 0x2d5   : > { %v851_v52 = vpop.f32.mrf.mxu3 }
 0x2d6   : > { %v852_v54 = vadd.f32 %v851_v52, %v816_v51 }
 0x2d8   : > { %v857_v58 = vmax.f32 %v852_v54, 0.0 }
 0x2da   : > { %v859_v60 = vpack.c.bf16 %v857_v58, %v856_v57 }
 0x2dc   : > { %954 = vmatpush.bf16.msra.mxu2 %v859_v60 }
 0x2e0   : > { %955 = vmatpush.bf16.msra.mxu2 %v858_v62 }
 0x2e3   : > { %1291 = vmatmul.msk.bf16.vlgmr.msra.gmra.mxu2 %vm625_vm0, %v1322_v63 }
 0x2f3   : > { %1292 = vmatmul.msk.bf16.gmra.mxu2 %vm625_vm0, %v1323_v0 }
 0x303   : > { %1293 = vmatmul.msk.bf16.gmra.mxu2 %vm625_vm0, %v1324_v1 }
 0x313   : > { %1294 = vmatmul.msk.bf16.gmra.mxu2 %vm625_vm0, %v1325_v2 }
 0x366   : > { %v957_v3 = vpop.f32.mrf.mxu2 }
 0x367   : > { %v958_v33 = vadd.f32 %v957_v3, %v879_v32 }
 0x369   : > { %v977_v37 = vmax.f32 %v958_v33, 0.0 }
 0x36e   : > { %v959_v4 = vpop.f32.mrf.mxu2 }
 0x36f   : > { %v960_v29 = vadd.f32 %v959_v4, %v884_v28 }
 0x371   : > { %v978_v35 = vmax.f32 %v960_v29, 0.0 }
 0x373   : > { %v989_v38 = vpack.c.bf16 %v978_v35, %v977_v37 }
 0x376   : > { %v962_v5 = vpop.f32.mrf.mxu2 }
 0x377   : > { %v963_v26 = vadd.f32 %v962_v5, %v889_v13 }
 0x379   : > { %v979_v34 = vmax.f32 %v963_v26, 0.0 }
 0x37e   : > { %v964_v6 = vpop.f32.mrf.mxu2 }
 0x37f   : > { %v965_v23 = vadd.f32 %v964_v6, %v894_v22 }
 0x381   : > { %v980_v30 = vmax.f32 %v965_v23, 0.0 }
 0x383   : > { %v990_v36 = vpack.c.bf16 %v980_v30, %v979_v34 }
 0x386   : > { %v967_v7 = vpop.f32.mrf.mxu2 }
 0x387   : > { %v968_v19 = vadd.f32 %v967_v7, %v899_v12 }
 0x389   : > { %v981_v27 = vmax.f32 %v968_v19, 0.0 }
 0x38e   : > { %v969_v8 = vpop.f32.mrf.mxu2 }
 0x38f   : > { %v970_v17 = vadd.f32 %v969_v8, %v904_v15 }
 0x391   : > { %v982_v24 = vmax.f32 %v970_v17, 0.0 }
 0x393   : > { %v991_v31 = vpack.c.bf16 %v982_v24, %v981_v27 }
 0x396   : > { %v972_v11 = vpop.f32.mrf.mxu2 }
 0x397   : > { %v973_v14 = vadd.f32 %v972_v11, %v909_v10 }
 0x399   : > { %v983_v20 = vmax.f32 %v973_v14, 0.0 }
 0x39e   : > { %v974_v16 = vpop.f32.mrf.mxu2 }
 0x39f   : > { %v975_v18 = vadd.f32 %v974_v16, %v914_v9 }
 0x3a1   : > { %v984_v21 = vmax.f32 %v975_v18, 0.0 }
 0x3a3   : > { %v992_v25 = vpack.c.bf16 %v984_v21, %v983_v20 }
 0x3a5   : > { %1037 = vmatpush.bf16.msrb.mxu3 %v992_v25 }
 0x3a9   : > { %1038 = vmatpush.bf16.msrb.mxu3 %v991_v31 }
 0x3ad   : > { %1039 = vmatpush.bf16.msrb.mxu3 %v990_v36 }
 0x3b1   : > { %1040 = vmatpush.bf16.msrb.mxu3 %v989_v38 }
 0x3b4   : > { %1303 = vmatmul.msk.bf16.vlgmr.msrb.gmra.mxu3 %vm717_vm1, %v1326_v39 }
 0x3c4   : > { %1304 = vmatmul.msk.bf16.gmra.mxu3 %vm717_vm1, %v1327_v40 }
 0x3c5   : > { %1422 = shalt.err (!%p1419_p5)
}
 0x3c6   : > { %s1864_s17 = smov 128   ;;  %s1493_s15 = smov 256   ;;  %v1000_v41 = vpop.permute.xlu2 %999  ;;  %v1005_v46 = vpop.permute.xlu0 %1004 }
 0x3c7   : > { %s1494_s22 = smov 8   ;;  %v1010_v53 = vpop.permute.xlu1 %1009  ;;  %s1220_s2 = sshll.u32 %s1633_s20, 5 }
 0x3c8   : > { %1329 = dma.vmem_to_hbm [thread:$0]  (%p1608_p6), %s1110_s28, 256, %s1112_s27, %s1082_s1, %s1864_s17, %s1493_s15, %s1494_s22  }
 0x3c9   : > { %s524_s1 = scalar_lea.vmem [#allocation3], %s1220_s2  ;;  %s1092_s28 = scalar_lea.hbm %s1859_s13, %s1789_s0 }
 0x3ca   : > { %s1093_s27 = sshll.u32 %s524_s1, 4  ;;  %s1095_s26 = sshll.u32 %s1092_s28, 4  ;;  %s1094_s27 = int_to_ptr.vmem [resolvable:$true] %s1093_s27  ;;  %s1096_s26 = int_to_ptr.hbm [resolvable:$true] %s1095_s26 }
 0x3cb   : > { %s1077_s21 = scalar_lea.sflag [#allocation4], %s1633_s20  ;;  %s1437_s25 = sshra.s32 %s1096_s26, 4  ;;  %s1438_s25 = int_to_ptr.hbm [resolvable:$true] %s1437_s25 }
 0x3cc   : > { %s1439_s18 = scalar_lea.hbm %s1438_s25, 32  ;;  %s1443_s3 = scalar_lea.hbm %s1859_s13, 64 }
 0x3cd   : > { %p1440_p7 = scmp.ne.s32.totalorder %s1438_s25, %s1439_s18  ;;  %p1444_p12 = scmp.lt.s32.totalorder %s1438_s25, %s1859_s13 }
 0x3ce   : > { %v1015_v61 = vpop.permute.xlu2 %1014  ;;  %p1445_p13 = scmp.lt.s32.totalorder %s1443_s3, %s1439_s18 }
 0x3cf   : > { %p1441_p10 = pnand %p1440_p7, %p1608_p6 }
 0x3d0   : > { %p1446_p0 = por %p1445_p13, %p1444_p12 }
 0x3d1   : > { %p1442_p11 = pneg %p1441_p10 }
 0x3d3   : > { %p1447_p1 = pnand %p1446_p0, %p1442_p11 }
 0x437   : > { %v1042_v42 = vpop.f32.mrf.mxu3 }
 0x438   : > { %v1043_v43 = vadd.f32 %v1042_v42, %v1000_v41 }
 0x43a   : > { %v1052_v44 = vsub.f32 0.0, %v1043_v43 }
 0x43c   : > { %v1056_v45 = vmul.f32 1.442695, %v1052_v44 }
 0x43e   : > { %1379 = vpow2.f32 %v1056_v45 }
 0x43f   : > { %v1044_v47 = vpop.f32.mrf.mxu3 }
 0x440   : > { %v1045_v48 = vadd.f32 %v1044_v47, %v1005_v46 }
 0x442   : > { %v1053_v49 = vsub.f32 0.0, %v1045_v48 }
 0x444   : > { %v1380_v50 = vpop.eup %1379  ;;  %v1058_v51 = vmul.f32 1.442695, %v1053_v49 }
 0x445   : > { %v1064_v52 = vadd.f32 1.0, %v1380_v50 }
 0x446   : > { %1381 = vpow2.f32 %v1058_v51 }
 0x447   : > { %1383 = vrcp.f32 %v1064_v52  ;;  %v1047_v54 = vpop.f32.mrf.mxu3 }
 0x448   : > { %v1048_v55 = vadd.f32 %v1047_v54, %v1010_v53 }
 0x44a   : > { %v1054_v56 = vsub.f32 0.0, %v1048_v55 }
 0x44c   : > { %v1382_v57 = vpop.eup %1381  ;;  %v1060_v58 = vmul.f32 1.442695, %v1054_v56 }
 0x44d   : > { %v1384_v59 = vpop.eup %1383  ;;  %v1065_v60 = vadd.f32 1.0, %v1382_v57 }
 0x44e   : > { %1072 = vst [vmem:[%s524_s1] sm:$0xff] %v1384_v59  ;;  %1385 = vpow2.f32 %v1060_v58 }
 0x44f   : > { %1387 = vrcp.f32 %v1065_v60  ;;  %v1049_v62 = vpop.f32.mrf.mxu3 }
 0x450   : > { %v1050_v63 = vadd.f32 %v1049_v62, %v1015_v61 }
 0x452   : > { %v1055_v0 = vsub.f32 0.0, %v1050_v63 }
 0x454   : > { %v1386_v1 = vpop.eup %1385  ;;  %v1062_v2 = vmul.f32 1.442695, %v1055_v0 }
 0x455   : > { %v1388_v3 = vpop.eup %1387  ;;  %v1066_v4 = vadd.f32 1.0, %v1386_v1 }
 0x456   : > { %1073 = vst [vmem:[%s524_s1 + $0x8] sm:$0xff] %v1388_v3  ;;  %1389 = vpow2.f32 %v1062_v2 }
 0x457   : > { %1391 = vrcp.f32 %v1066_v4 }
 0x45c   : > { %v1390_v5 = vpop.eup %1389 }
 0x45d   : > { %v1392_v6 = vpop.eup %1391  ;;  %v1067_v7 = vadd.f32 1.0, %v1390_v5 }
 0x45e   : > { %1074 = vst [vmem:[%s524_s1 + $0x10] sm:$0xff] %v1392_v6 }
 0x45f   : > { %1393 = vrcp.f32 %v1067_v7 }
 0x465   : > { %v1394_v8 = vpop.eup %1393 }
 0x466   : > { %1075 = vst [vmem:[%s524_s1 + $0x18] sm:$0xff] %v1394_v8 }
 0x467   : > { %1450 = shalt.err (!%p1447_p1)
}
 0x468   : > { %s1881_s20 = smov 128  }
 0x469   : > { %1328 = dma.vmem_to_hbm [thread:$0]  (%p1608_p6), %s1094_s27, 512, %s1096_s26, %s1077_s21, %s1881_s20, %s1493_s15, %s1494_s22  }
 0x46a PF: > { %s1126_s17 = sand.u32 1, %s1477_s29   ;;  %p1333_p2 = pnand %p1215_p9, %p1612_p8 }
 0x46b   : > { %s1127_s1 = scalar_lea.sflag [#allocation4], %s1126_s17 }
 0x46c   : > { %p1334_p3 = pneg %p1333_p2 }
 0x46e   : > { %1468 = dma.done.wait (%p1334_p3), %s1127_s1, 512  }
 0x46f   : > { %1470 = vsyncadd (%p1334_p3), %s1127_s1, 4294966784  ;;  %s1137_s28 = scalar_lea.sflag [#allocation6], %s1126_s17 }
 0x470   : > { %1472 = dma.done.wait (%p1334_p3), %s1137_s28, 256  }
 0x471   : > { %1474 = vsyncadd (%p1334_p3), %s1137_s28, 4294967040  ;;  %s1882_s23 = sld [smem:[#allocation9_spill]]  ;;  %p28_p6 = scmp.ge.s32.totalorder %s1593_s19, 4  }
 0x472   : > { %s1883_s15 = sld [smem:[#allocation10_spill]]  ;;  %s1884_s29 = smov %s1481_s30 }
 0x473   : > { %s1886_s16 = smov %s1593_s19  ;;  %30 = sbr.rel (!%p28_p6) target bundleno = 11 (0xb), region = 170 }
 0x477   : > { %s1885_s30 = smov %s1882_s23 }
 0x478   :  { %1143 = vsyncpa [#allocation4], 1 }
 0x479   :  { %1145 = vsyncpa [#allocation4 + $0x1], 1 }
 0x47a   :  { %1146 = vsyncpa [#allocation6], 1 }
 0x47b   :  { %1148 = vsyncpa [#allocation6 + $0x1], 1 }

</bundles_post_ra>
